<compile_context>
chip_gen: v7x
topology: tpu7x:2x2x1
jax: 0.10.0
libtpu: 0.0.40
codegen_flags: <defaults>
</compile_context>

<pallas_src>
import functools

import jax
import jax.numpy as jnp
from jax.experimental import pallas as pl
from jax.experimental.pallas import tpu as pltpu

LANE = 128      # TPU lane width (last-dim tiling unit)
BLOCK_M = 32    # batch rows per grid step (multiple of 8 sublanes; 32 keeps
                # the int8 state stores fully dense too)


def _round_up(n, m):
    return ((n + m - 1) // m) * m


def four_layers_kernel(x_ref, w1t_ref, b1_ref, w2t_ref, b2_ref, w3t_ref, b3_ref,
                       s1_ref, s2_ref, out_ref):
    x = x_ref[...]                                                   # (BM, D_in)

    # h1 = relu(x @ W1.T + b1)
    h1 = jnp.dot(x, w1t_ref[...], preferred_element_type=jnp.float32) + b1_ref[...]
    h1 = jnp.maximum(h1, 0.0)                                        # (BM, P_H1)

    # h2 = relu(h1 @ W2.T + b2)
    h2 = jnp.dot(h1, w2t_ref[...], preferred_element_type=jnp.float32) + b2_ref[...]
    h2 = jnp.maximum(h2, 0.0)                                        # (BM, P_H2)

    # out = h2 @ W3.T + b3
    out = jnp.dot(h2, w3t_ref[...], preferred_element_type=jnp.float32) + b3_ref[...]

    # Active states written directly as two lane-dense int8 slabs (no concat).
    s1_ref[...] = (h1 > 0.0).astype(jnp.int8)
    s2_ref[...] = (h2 > 0.0).astype(jnp.int8)
    out_ref[...] = out.astype(out_ref.dtype)


@functools.partial(jax.jit, static_argnames=("block_m",))
def four_layers_batched(x, params, *, block_m=BLOCK_M):
    """x: (B, D_in) f32. Returns (states (B, D_H1+D_H2) int32, out (B, D_out) f32)."""
    w1, b1 = params["w1"], params["b1"]   # (D_H1, D_in), (D_H1,)
    w2, b2 = params["w2"], params["b2"]   # (D_H2, D_H1), (D_H2,)
    w3, b3 = params["w3"], params["b3"]   # (D_out, D_H2), (D_out,)

    batch, d_in = x.shape
    d_h1, d_h2, d_out = w1.shape[0], w2.shape[0], w3.shape[0]

    # Lane-dense padded widths; sublane-aligned padded batch.
    p_h1 = _round_up(d_h1, LANE)
    p_h2 = _round_up(d_h2, LANE)
    p_out = _round_up(d_out, LANE)
    m_pad = _round_up(max(batch, 1), block_m)

    f32 = jnp.float32

    def pad2(a, rows, cols):
        r, c = a.shape
        return jnp.pad(a.astype(f32), ((0, rows - r), (0, cols - c)))

    # Glue: transpose weights, zero-pad features to 128-lane multiples, lift
    # biases to 2-D rows. Zero padding is exact: padded h-lanes come out as
    # relu(0) = 0 and feed zero-weight rows of the next layer.
    xp = pad2(x, m_pad, d_in)
    w1t = pad2(w1.T, d_in, p_h1)
    b1p = pad2(b1.reshape(1, -1), 1, p_h1)
    w2t = pad2(w2.T, p_h1, p_h2)
    b2p = pad2(b2.reshape(1, -1), 1, p_h2)
    w3t = pad2(w3.T, p_h2, p_out)
    b3p = pad2(b3.reshape(1, -1), 1, p_out)

    grid = (m_pad // block_m,)
    row_map = lambda i: (i, 0)     # batch-tiled operands
    fixed_map = lambda i: (0, 0)   # weights/biases: resident, same block every step

    s1, s2, out = pl.pallas_call(
        four_layers_kernel,
        out_shape=(
            jax.ShapeDtypeStruct((m_pad, p_h1), jnp.int8),
            jax.ShapeDtypeStruct((m_pad, p_h2), jnp.int8),
            jax.ShapeDtypeStruct((m_pad, p_out), jnp.float32),
        ),
        grid=grid,
        in_specs=[
            pl.BlockSpec((block_m, d_in), row_map),
            pl.BlockSpec((d_in, p_h1), fixed_map),
            pl.BlockSpec((1, p_h1), fixed_map),
            pl.BlockSpec((p_h1, p_h2), fixed_map),
            pl.BlockSpec((1, p_h2), fixed_map),
            pl.BlockSpec((p_h2, p_out), fixed_map),
            pl.BlockSpec((1, p_out), fixed_map),
        ],
        out_specs=(
            pl.BlockSpec((block_m, p_h1), row_map),
            pl.BlockSpec((block_m, p_h2), row_map),
            pl.BlockSpec((block_m, p_out), row_map),
        ),
        compiler_params=pltpu.CompilerParams(
            dimension_semantics=("parallel",)),  # both TCs on v7x
    )(xp, w1t, b1p, w2t, b2p, w3t, b3p)

    # Slice off lane/sublane padding; widen states to int32; concat in wrapper
    # (free at XLA level), matching np.concatenate((h1_states, h2_states)).
    states = jnp.concatenate(
        [s1[:batch, :d_h1], s2[:batch, :d_h2]], axis=-1).astype(jnp.int32)
    return states, out[:batch, :d_out]


def four_layers_forward(x, params):
    """Module-faithful forward: x is (1, D_in); act_states is 1-D (D_H1+D_H2,)."""
    states, out = four_layers_batched(x, params)
    act_states = states.reshape(states.shape[-1])   # batch == 1, as in the module
    return act_states, out


def _init_params(key, d_in, d_h1, d_h2, d_out):
    """Deterministic PyTorch-Linear-style (uniform +/- 1/sqrt(fan_in)) init."""
    ks = jax.random.split(key, 6)

    def lin(kw, kb, fan_in, fan_out):
        bound = 1.0 / jnp.sqrt(fan_in)
        w = jax.random.uniform(kw, (fan_out, fan_in), jnp.float32, -bound, bound)
        b = jax.random.uniform(kb, (fan_out,), jnp.float32, -bound, bound)
        return w, b

    w1, b1 = lin(ks[0], ks[1], d_in, d_h1)
    w2, b2 = lin(ks[2], ks[3], d_h1, d_h2)
    w3, b3 = lin(ks[4], ks[5], d_h2, d_out)
    return {"w1": w1, "b1": b1, "w2": w2, "b2": b2, "w3": w3, "b3": b3}


def _reference_batched(x, p):
    """Pure-JAX reference mirroring the PyTorch math, batched."""
    h1 = jnp.maximum(x @ p["w1"].T + p["b1"], 0.0)
    h2 = jnp.maximum(h1 @ p["w2"].T + p["b2"], 0.0)
    out = h2 @ p["w3"].T + p["b3"]
    states = jnp.concatenate([(h1 > 0).astype(jnp.int32),
                              (h2 > 0).astype(jnp.int32)], axis=-1)
    return states, out


def _reference_forward(x, p):
    states, out = _reference_batched(x, p)
    return states.reshape(-1), out


if __name__ == "__main__":
    D_in, D_H1, D_H2, D_out = 32, 16, 16, 8

    key = jax.random.PRNGKey(0)
    k_x, k_p, k_xb = jax.random.split(key, 3)
    params = _init_params(k_p, D_in, D_H1, D_H2, D_out)

    # 1) Module-semantics path (batch=1, 1-D act_states) — matches FourLayers.forward.
    x1 = jax.random.normal(k_x, (1, D_in), jnp.float32)
    act_states, out = four_layers_forward(x1, params)
    jax.block_until_ready((act_states, out))

    ref_states, ref_out = _reference_forward(x1, params)
    assert act_states.shape == (D_H1 + D_H2,)
    assert out.shape == (1, D_out)
    assert bool(jnp.all(act_states == ref_states))
    assert bool(jnp.max(jnp.abs(out - ref_out)) < 1e-4)

    # 2) Batched path (amortizes dispatch/DMA overhead; exercises grid > 1).
    xb = jax.random.normal(k_xb, (64, D_in), jnp.float32)
    states_b, out_b = four_layers_batched(xb, params)
    jax.block_until_ready((states_b, out_b))

    ref_states_b, ref_out_b = _reference_batched(xb, params)
    assert states_b.shape == (64, D_H1 + D_H2)
    assert out_b.shape == (64, D_out)
    assert bool(jnp.all(states_b == ref_states_b))
    assert bool(jnp.max(jnp.abs(out_b - ref_out_b)) < 1e-4)

    print("KERNEL_OK")
</pallas_src>

<mosaic_0001>
module attributes {stable_mosaic.version = 11 : i64} {
  func.func @four_layers_kernel(%arg0: i32, %arg1: memref<32x32xf32, #tpu.memory_space<vmem>>, %arg2: memref<32x128xf32, #tpu.memory_space<vmem>>, %arg3: memref<1x128xf32, #tpu.memory_space<vmem>>, %arg4: memref<128x128xf32, #tpu.memory_space<vmem>>, %arg5: memref<1x128xf32, #tpu.memory_space<vmem>>, %arg6: memref<128x128xf32, #tpu.memory_space<vmem>>, %arg7: memref<1x128xf32, #tpu.memory_space<vmem>>, %arg8: memref<32x128xi8, #tpu.memory_space<vmem>>, %arg9: memref<32x128xi8, #tpu.memory_space<vmem>>, %arg10: memref<32x128xf32, #tpu.memory_space<vmem>>) attributes {dimension_semantics = [#tpu.dimension_semantics<parallel>], iteration_bounds = array<i64: 1>, scalar_prefetch = 0 : i64, scratch_operands = 0 : i64, tpu.core_type = #tpu.core_type<tc>, window_params = [{transform_indices = @transform_0, window_bounds = array<i64: 32, 32>}, {pipeline_mode = #tpu.pipeline_mode<synchronous>, transform_indices = @transform_1, window_bounds = array<i64: 32, 128>}, {pipeline_mode = #tpu.pipeline_mode<synchronous>, transform_indices = @transform_2, window_bounds = array<i64: 1, 128>}, {pipeline_mode = #tpu.pipeline_mode<synchronous>, transform_indices = @transform_3, window_bounds = array<i64: 128, 128>}, {pipeline_mode = #tpu.pipeline_mode<synchronous>, transform_indices = @transform_4, window_bounds = array<i64: 1, 128>}, {pipeline_mode = #tpu.pipeline_mode<synchronous>, transform_indices = @transform_5, window_bounds = array<i64: 128, 128>}, {pipeline_mode = #tpu.pipeline_mode<synchronous>, transform_indices = @transform_6, window_bounds = array<i64: 1, 128>}, {transform_indices = @transform_7, window_bounds = array<i64: 32, 128>}, {transform_indices = @transform_8, window_bounds = array<i64: 32, 128>}, {transform_indices = @transform_9, window_bounds = array<i64: 32, 128>}]} {
    %c0 = arith.constant 0 : index
    %c0_0 = arith.constant 0 : index
    %0 = vector.load %arg1[%c0, %c0_0] : memref<32x32xf32, #tpu.memory_space<vmem>>, vector<32x32xf32>
    %c0_1 = arith.constant 0 : index
    %c0_2 = arith.constant 0 : index
    %1 = vector.load %arg2[%c0_1, %c0_2] : memref<32x128xf32, #tpu.memory_space<vmem>>, vector<32x128xf32>
    %cst = arith.constant dense<0.000000e+00> : vector<32x128xf32>
    %2 = tpu.matmul %0, %1, %cst {dimension_numbers = #tpu.dot_dimension_numbers<[1], [0], [0], [1], [0, 0, 1, 1], [], []>} : vector<32x32xf32>, vector<32x128xf32>, vector<32x128xf32> -> vector<32x128xf32>
    %c0_3 = arith.constant 0 : index
    %c0_4 = arith.constant 0 : index
    %3 = vector.load %arg3[%c0_3, %c0_4] : memref<1x128xf32, #tpu.memory_space<vmem>>, vector<1x128xf32>
    %4 = vector.broadcast %3 : vector<1x128xf32> to vector<32x128xf32>
    %5 = arith.addf %2, %4 : vector<32x128xf32>
    %cst_5 = arith.constant 0.000000e+00 : f32
    %6 = vector.broadcast %cst_5 : f32 to vector<32x128xf32>
    %7 = arith.maximumf %5, %6 : vector<32x128xf32>
    %c0_6 = arith.constant 0 : index
    %c0_7 = arith.constant 0 : index
    %8 = vector.load %arg4[%c0_6, %c0_7] : memref<128x128xf32, #tpu.memory_space<vmem>>, vector<128x128xf32>
    %cst_8 = arith.constant dense<0.000000e+00> : vector<32x128xf32>
    %9 = tpu.matmul %7, %8, %cst_8 {dimension_numbers = #tpu.dot_dimension_numbers<[1], [0], [0], [1], [0, 0, 1, 1], [], []>} : vector<32x128xf32>, vector<128x128xf32>, vector<32x128xf32> -> vector<32x128xf32>
    %c0_9 = arith.constant 0 : index
    %c0_10 = arith.constant 0 : index
    %10 = vector.load %arg5[%c0_9, %c0_10] : memref<1x128xf32, #tpu.memory_space<vmem>>, vector<1x128xf32>
    %11 = vector.broadcast %10 : vector<1x128xf32> to vector<32x128xf32>
    %12 = arith.addf %9, %11 : vector<32x128xf32>
    %cst_11 = arith.constant 0.000000e+00 : f32
    %13 = vector.broadcast %cst_11 : f32 to vector<32x128xf32>
    %14 = arith.maximumf %12, %13 : vector<32x128xf32>
    %c0_12 = arith.constant 0 : index
    %c0_13 = arith.constant 0 : index
    %15 = vector.load %arg6[%c0_12, %c0_13] : memref<128x128xf32, #tpu.memory_space<vmem>>, vector<128x128xf32>
    %cst_14 = arith.constant dense<0.000000e+00> : vector<32x128xf32>
    %16 = tpu.matmul %14, %15, %cst_14 {dimension_numbers = #tpu.dot_dimension_numbers<[1], [0], [0], [1], [0, 0, 1, 1], [], []>} : vector<32x128xf32>, vector<128x128xf32>, vector<32x128xf32> -> vector<32x128xf32>
    %c0_15 = arith.constant 0 : index
    %c0_16 = arith.constant 0 : index
    %17 = vector.load %arg7[%c0_15, %c0_16] : memref<1x128xf32, #tpu.memory_space<vmem>>, vector<1x128xf32>
    %18 = vector.broadcast %17 : vector<1x128xf32> to vector<32x128xf32>
    %19 = arith.addf %16, %18 : vector<32x128xf32>
    %cst_17 = arith.constant 0.000000e+00 : f32
    %20 = vector.broadcast %cst_17 : f32 to vector<32x128xf32>
    %21 = arith.cmpf ogt, %7, %20 : vector<32x128xf32>
    %22 = arith.extui %21 : vector<32x128xi1> to vector<32x128xi8>
    %c0_18 = arith.constant 0 : index
    %c0_19 = arith.constant 0 : index
    %23 = vector.load %arg8[%c0_18, %c0_19] : memref<32x128xi8, #tpu.memory_space<vmem>>, vector<32x128xi8>
    tpu.vector_store %arg8[%c0_18, %c0_19], %22 {strides = array<i32>} : memref<32x128xi8, #tpu.memory_space<vmem>>, vector<32x128xi8>,
    %cst_20 = arith.constant 0.000000e+00 : f32
    %24 = vector.broadcast %cst_20 : f32 to vector<32x128xf32>
    %25 = arith.cmpf ogt, %14, %24 : vector<32x128xf32>
    %26 = arith.extui %25 : vector<32x128xi1> to vector<32x128xi8>
    %c0_21 = arith.constant 0 : index
    %c0_22 = arith.constant 0 : index
    %27 = vector.load %arg9[%c0_21, %c0_22] : memref<32x128xi8, #tpu.memory_space<vmem>>, vector<32x128xi8>
    tpu.vector_store %arg9[%c0_21, %c0_22], %26 {strides = array<i32>} : memref<32x128xi8, #tpu.memory_space<vmem>>, vector<32x128xi8>,
    %c0_23 = arith.constant 0 : index
    %c0_24 = arith.constant 0 : index
    %28 = vector.load %arg10[%c0_23, %c0_24] : memref<32x128xf32, #tpu.memory_space<vmem>>, vector<32x128xf32>
    tpu.vector_store %arg10[%c0_23, %c0_24], %19 {strides = array<i32>} : memref<32x128xf32, #tpu.memory_space<vmem>>, vector<32x128xf32>,
    return
  }
  func.func @transform_0(%arg0: i32) -> (i32, i32) {
    %c0_i32 = arith.constant 0 : i32
    %c0_i32_0 = arith.constant 0 : i32
    return %arg0, %c0_i32 : i32, i32
  }
  func.func @transform_1(%arg0: i32) -> (i32, i32) {
    %c0_i32 = arith.constant 0 : i32
    %c0_i32_0 = arith.constant 0 : i32
    %c0_i32_1 = arith.constant 0 : i32
    return %c0_i32, %c0_i32_0 : i32, i32
  }
  func.func @transform_2(%arg0: i32) -> (i32, i32) {
    %c0_i32 = arith.constant 0 : i32
    %c0_i32_0 = arith.constant 0 : i32
    %c0_i32_1 = arith.constant 0 : i32
    return %c0_i32, %c0_i32_0 : i32, i32
  }
  func.func @transform_3(%arg0: i32) -> (i32, i32) {
    %c0_i32 = arith.constant 0 : i32
    %c0_i32_0 = arith.constant 0 : i32
    %c0_i32_1 = arith.constant 0 : i32
    return %c0_i32, %c0_i32_0 : i32, i32
  }
  func.func @transform_4(%arg0: i32) -> (i32, i32) {
    %c0_i32 = arith.constant 0 : i32
    %c0_i32_0 = arith.constant 0 : i32
    %c0_i32_1 = arith.constant 0 : i32
    return %c0_i32, %c0_i32_0 : i32, i32
  }
  func.func @transform_5(%arg0: i32) -> (i32, i32) {
    %c0_i32 = arith.constant 0 : i32
    %c0_i32_0 = arith.constant 0 : i32
    %c0_i32_1 = arith.constant 0 : i32
    return %c0_i32, %c0_i32_0 : i32, i32
  }
  func.func @transform_6(%arg0: i32) -> (i32, i32) {
    %c0_i32 = arith.constant 0 : i32
    %c0_i32_0 = arith.constant 0 : i32
    %c0_i32_1 = arith.constant 0 : i32
    return %c0_i32, %c0_i32_0 : i32, i32
  }
  func.func @transform_7(%arg0: i32) -> (i32, i32) {
    %c0_i32 = arith.constant 0 : i32
    %c0_i32_0 = arith.constant 0 : i32
    return %arg0, %c0_i32 : i32, i32
  }
  func.func @transform_8(%arg0: i32) -> (i32, i32) {
    %c0_i32 = arith.constant 0 : i32
    %c0_i32_0 = arith.constant 0 : i32
    return %arg0, %c0_i32 : i32, i32
  }
  func.func @transform_9(%arg0: i32) -> (i32, i32) {
    %c0_i32 = arith.constant 0 : i32
    %c0_i32_0 = arith.constant 0 : i32
    return %arg0, %c0_i32 : i32, i32
  }
}

</mosaic_0001>

<bundles_post_ra>
// kernel: four_layers_batched.1
= control target key start
LH: loop header
LB: loop body
LE: loop exit
PB: predicated region body
PF: predicated region fallthrough
CT: control target
= control target key end

     0   :  { %vm46_vm0 = vcmask 261120   ;;  %s882_s1 = inlined_call_operand.vmem [shape: f32[32,128], index: 1, kind: input, shape index: {}]   ;;  %s883_s0 = inlined_call_operand.vmem [shape: f32[32,32], index: 0, kind: input, shape index: {}]   ;;  %s884_s3 = inlined_call_operand.vmem [shape: f32[128,128], index: 3, kind: input, shape index: {}]   ;;  %s885_s5 = inlined_call_operand.vmem [shape: f32[128,128], index: 5, kind: input, shape index: {}]   ;;  %s886_s2 = inlined_call_operand.vmem [shape: f32[1,128], index: 2, kind: input, shape index: {}]   ;;  %s887_s7 = inlined_call_operand.vmem [shape: s8[32,128], index: 7, kind: output, shape index: {0}]   ;;  %s888_s4 = inlined_call_operand.vmem [shape: f32[1,128], index: 4, kind: input, shape index: {}]   ;;  %s889_s8 = inlined_call_operand.vmem [shape: s8[32,128], index: 8, kind: output, shape index: {1}]   ;;  %s890_s6 = inlined_call_operand.vmem [shape: f32[1,128], index: 6, kind: input, shape index: {}]   ;;  %s891_s9 = inlined_call_operand.vmem [shape: f32[32,128], index: 9, kind: output, shape index: {2}]  }
   0x1   :  { %v35_v0 = vld [vmem:[%s882_s1] sm:$0xff]  ;;  %v36_v1 = vld [vmem:[%s882_s1 + $0x8] sm:$0xff]  ;;  %v37_v2 = vld [vmem:[%s882_s1 + $0x10] sm:$0xff] }
   0x2   :  { %v577_v3 = vpack.c.bf16 %v36_v1, %v35_v0  ;;  %v38_v4 = vld [vmem:[%s882_s1 + $0x18] sm:$0xff]  ;;  %v31_v5 = vld [vmem:[%s883_s0] sm:$0xff]  ;;  %v149_v8 = vld [vmem:[%s884_s3 + $0x8] sm:$0xff] }
   0x3   :  { %v581_v6 = vpack.c.bf16 %v38_v4, %v37_v2  ;;  %495 = vmatprep.mubr.msk.f32.mxu0 %vm46_vm0, %v31_v5  ;;  %v148_v7 = vld [vmem:[%s884_s3] sm:$0xff]  ;;  %v150_v9 = vld [vmem:[%s884_s3 + $0x10] sm:$0xff]  ;;  %v151_v10 = vld [vmem:[%s884_s3 + $0x18] sm:$0xff]  ;;  %v650_v5 = vmov 0  }
   0x4   :  { %578 = vmatprep.subr.bf16.mxu0 %v577_v3  ;;  %v585_v11 = vpack.c.bf16 %v149_v8, %v148_v7  ;;  %v589_v12 = vpack.c.bf16 %v151_v10, %v150_v9  ;;  %v152_v13 = vld [vmem:[%s884_s3 + $0x20] sm:$0xff]  ;;  %v153_v14 = vld [vmem:[%s884_s3 + $0x28] sm:$0xff]  ;;  %v33_v17 = vld [vmem:[%s883_s0 + $0x10] sm:$0xff] }
   0x5   :  { %580 = vmatpush3.bf16.msra.mxu0 %v577_v3  ;;  %v32_v15 = vld [vmem:[%s883_s0 + $0x8] sm:$0xff]  ;;  %v593_v16 = vpack.c.bf16 %v153_v14, %v152_v13  ;;  %v154_v18 = vld [vmem:[%s884_s3 + $0x30] sm:$0xff]  ;;  %v155_v19 = vld [vmem:[%s884_s3 + $0x38] sm:$0xff] }
   0x6   :  { %582 = vmatprep.subr.bf16.mxu0 %v581_v6  ;;  %586 = vmatprep.subr.bf16.mxu1 %v585_v11  ;;  %v34_v20 = vld [vmem:[%s883_s0 + $0x18] sm:$0xff]  ;;  %v597_v21 = vpack.c.bf16 %v155_v19, %v154_v18  ;;  %v156_v22 = vld [vmem:[%s884_s3 + $0x40] sm:$0xff]  ;;  %v157_v23 = vld [vmem:[%s884_s3 + $0x48] sm:$0xff] }
   0x7   :  { %588 = vmatpush3.bf16.msra.mxu1 %v585_v11  ;;  %v601_v24 = vpack.c.bf16 %v157_v23, %v156_v22  ;;  %v158_v25 = vld [vmem:[%s884_s3 + $0x50] sm:$0xff]  ;;  %v159_v26 = vld [vmem:[%s884_s3 + $0x58] sm:$0xff]  ;;  %v160_v28 = vld [vmem:[%s884_s3 + $0x60] sm:$0xff] }
   0x8   :  { %590 = vmatprep.subr.bf16.mxu1 %v589_v12  ;;  %v605_v27 = vpack.c.bf16 %v159_v26, %v158_v25  ;;  %v161_v29 = vld [vmem:[%s884_s3 + $0x68] sm:$0xff]  ;;  %v162_v31 = vld [vmem:[%s884_s3 + $0x70] sm:$0xff]  ;;  %v163_v32 = vld [vmem:[%s884_s3 + $0x78] sm:$0xff] }
   0x9   :  { %584 = vmatpush3.bf16.msra.mxu0 %v581_v6  ;;  %v609_v30 = vpack.c.bf16 %v161_v29, %v160_v28  ;;  %v613_v33 = vpack.c.bf16 %v163_v32, %v162_v31  ;;  %v260_v34 = vld [vmem:[%s885_s5] sm:$0xff]  ;;  %v261_v35 = vld [vmem:[%s885_s5 + $0x8] sm:$0xff]  ;;  %v262_v36 = vld [vmem:[%s885_s5 + $0x10] sm:$0xff] }
   0xa   :  { %v617_v37 = vpack.c.bf16 %v261_v35, %v260_v34  ;;  %v263_v38 = vld [vmem:[%s885_s5 + $0x18] sm:$0xff]  ;;  %v264_v40 = vld [vmem:[%s885_s5 + $0x20] sm:$0xff]  ;;  %v265_v41 = vld [vmem:[%s885_s5 + $0x28] sm:$0xff] }
   0xb   :  { %592 = vmatpush3.bf16.msra.mxu1 %v589_v12  ;;  %v621_v39 = vpack.c.bf16 %v263_v38, %v262_v36  ;;  %v625_v42 = vpack.c.bf16 %v265_v41, %v264_v40  ;;  %v266_v43 = vld [vmem:[%s885_s5 + $0x30] sm:$0xff]  ;;  %v267_v44 = vld [vmem:[%s885_s5 + $0x38] sm:$0xff]  ;;  %v268_v46 = vld [vmem:[%s885_s5 + $0x40] sm:$0xff] }
   0xc   :  { %496 = vmatmul.mubr.msk.f32.vlgmr.msra.gmra.mrb[0].mxu0 %vm46_vm0, %v32_v15  ;;  %594 = vmatprep.subr.bf16.mxu1 %v593_v16  ;;  %v629_v45 = vpack.c.bf16 %v267_v44, %v266_v43  ;;  %v269_v47 = vld [vmem:[%s885_s5 + $0x48] sm:$0xff]  ;;  %v270_v49 = vld [vmem:[%s885_s5 + $0x50] sm:$0xff]  ;;  %v271_v50 = vld [vmem:[%s885_s5 + $0x58] sm:$0xff] }
   0xd   :  { %498 = vmatprep.mubr.msk.f32.mxu0 %vm46_vm0, %v33_v17  ;;  %618 = vmatprep.subr.bf16.mxu0 %v617_v37  ;;  %v633_v48 = vpack.c.bf16 %v269_v47, %v268_v46  ;;  %v637_v51 = vpack.c.bf16 %v271_v50, %v270_v49  ;;  %v272_v52 = vld [vmem:[%s885_s5 + $0x60] sm:$0xff]  ;;  %v273_v53 = vld [vmem:[%s885_s5 + $0x68] sm:$0xff]  ;;  %v274_v19 = vld [vmem:[%s885_s5 + $0x70] sm:$0xff] }
   0xe   :  { %620 = vmatpush3.bf16.msra.mxu0 %v617_v37  ;;  %v641_v54 = vpack.c.bf16 %v273_v53, %v272_v52  ;;  %v432_v55 = vld [vmem:[%s886_s2] ss:$0 sm:$0xff] }
   0xf   :  { %596 = vmatpush3.bf16.msra.mxu1 %v593_v16  ;;  %622 = vmatprep.subr.bf16.mxu0 %v621_v39  ;;  %v437_v22 = vld [vmem:[%s888_s4] ss:$0 sm:$0xff] }
  0x10   :  { %499 = vmatmul.mubr.msk.f32.gmra.mrb[2].mxu0 %vm46_vm0, %v34_v20  ;;  %598 = vmatprep.subr.bf16.mxu1 %v597_v21  ;;  %v275_v20 = vld [vmem:[%s885_s5 + $0x78] sm:$0xff]  ;;  %v438_v49 = vld [vmem:[%s890_s6] ss:$0 sm:$0xff] }
  0x12   :  { %624 = vmatpush3.bf16.msra.mxu0 %v621_v39 }
  0x13   :  { %600 = vmatpush3.bf16.msra.mxu1 %v597_v21  ;;  %626 = vmatprep.subr.bf16.mxu0 %v625_v42  ;;  %v645_v21 = vpack.c.bf16 %v275_v20, %v274_v19 }
  0x14   :  { %602 = vmatprep.subr.bf16.mxu1 %v601_v24 }
  0x16   :  { %628 = vmatpush3.bf16.msra.mxu0 %v625_v42 }
  0x17   :  { %604 = vmatpush3.bf16.msra.mxu1 %v601_v24  ;;  %630 = vmatprep.subr.bf16.mxu0 %v629_v45 }
  0x18   :  { %606 = vmatprep.subr.bf16.mxu1 %v605_v27 }
  0x1a   :  { %632 = vmatpush3.bf16.msra.mxu0 %v629_v45 }
  0x1b   :  { %608 = vmatpush3.bf16.msra.mxu1 %v605_v27  ;;  %634 = vmatprep.subr.bf16.mxu0 %v633_v48 }
  0x1c   :  { %610 = vmatprep.subr.bf16.mxu1 %v609_v30 }
  0x1e   :  { %636 = vmatpush3.bf16.msra.mxu0 %v633_v48 }
  0x1f   :  { %612 = vmatpush3.bf16.msra.mxu1 %v609_v30  ;;  %638 = vmatprep.subr.bf16.mxu0 %v637_v51 }
  0x20   :  { %614 = vmatprep.subr.bf16.mxu1 %v613_v33 }
  0x22   :  { %640 = vmatpush3.bf16.msra.mxu0 %v637_v51 }
  0x23   :  { %616 = vmatpush3.bf16.msra.mxu1 %v613_v33  ;;  %642 = vmatprep.subr.bf16.mxu0 %v641_v54 }
  0x26   :  { %644 = vmatpush3.bf16.msra.mxu0 %v641_v54 }
  0x27   :  { %646 = vmatprep.subr.bf16.mxu0 %v645_v21 }
  0x2a   :  { %648 = vmatpush3.bf16.msra.mxu0 %v645_v21 }
  0xdf   :  { %v497_v56 = vpop.f32.mrb[0].mxu0 }
  0xe0   :  { %v131_v57 = vadd.f32 %v497_v56, %v432_v55  ;;  %v125_v58 = vpop.f32.mrb[1].mxu0 }
  0xe1   :  { %v126_v59 = vadd.f32 %v432_v55, %v125_v58 }
  0xe2   :  { %v145_v60 = vmax.f32 %v131_v57, 0.0 }
  0xe3   :  { %v144_v61 = vmax.f32 %v126_v59, 0.0  ;;  %v500_v62 = vpop.f32.mrb[2].mxu0 }
  0xe4   :  { %vm822_vm1 = vcmp.gt.f32.partialorder %v145_v60, 0.0  ;;  %v141_v0 = vadd.f32 %v500_v62, %v432_v55  ;;  %v135_v1 = vpop.f32.mrb[3].mxu0 }
  0xe5   :  { %vm368_vm2 = vcmp.gt.f32.partialorder %v144_v61, 0.0  ;;  %v136_v2 = vadd.f32 %v432_v55, %v135_v1  ;;  %533 = vmatprep.mubr.f32.mxu1 %v144_v61 }
  0xe6   :  { %vm372_vm3 = vmpackc.low %vm822_vm1, %vm368_vm2  ;;  %v147_v3 = vmax.f32 %v141_v0, 0.0  ;;  %534 = vmatmul.mubr.f32.vlgmr.msra.gmra.mrb[0].mxu1 %v145_v60 }
  0xe7   :  { %v146_v4 = vmax.f32 %v136_v2, 0.0 }
  0xe8   :  { %vm371_vm4 = vcmp.gt.f32.partialorder %v147_v3, 0.0 }
  0xe9   :  { %vm370_vm5 = vcmp.gt.f32.partialorder %v146_v4, 0.0  ;;  %536 = vmatprep.mubr.f32.mxu1 %v146_v4 }
  0xea   :  { %vm373_vm6 = vmpackc.low %vm371_vm4, %vm370_vm5  ;;  %537 = vmatmul.mubr.f32.gmra.mrb[2].mxu1 %v147_v3 }
  0xeb   :  { %vm374_vm7 = vmpackc.even %vm373_vm6, %vm372_vm3 }
  0xec   :  { %v375_v6 = vsel %vm374_vm7, 16843009, %v650_v5 }
  0xed   :  { %v376_v7 = vunpack.c.0.s8 %v375_v6  ;;  %v377_v8 = vunpack.c.1.s8 %v375_v6  ;;  %v378_v9 = vunpack.c.2.s8 %v375_v6  ;;  %v379_v10 = vunpack.c.3.s8 %v375_v6 }
  0xef   :  { %v380_v11 = vpack.c.b16 %v376_v7, %v376_v7  ;;  %v382_v12 = vpack.c.b16 %v377_v8, %v377_v8  ;;  %v384_v13 = vpack.c.b16 %v378_v9, %v378_v9  ;;  %v386_v14 = vpack.c.b16 %v379_v10, %v379_v10 }
  0xf1   :  { %v381_v15 = vpack.c.b8 %v380_v11, %v380_v11  ;;  %v383_v16 = vpack.c.b8 %v382_v12, %v382_v12  ;;  %v385_v17 = vpack.c.b8 %v384_v13, %v384_v13  ;;  %v387_v18 = vpack.c.b8 %v386_v14, %v386_v14 }
  0xf3   :  { %388 = vst [vmem:[%s887_s7] sm:$0x3] %v381_v15  ;;  %389 = vst [vmem:[%s887_s7 + $0x2] sm:$0x3] %v383_v16 }
  0xf4   :  { %390 = vst [vmem:[%s887_s7 + $0x4] sm:$0x3] %v385_v17  ;;  %391 = vst [vmem:[%s887_s7 + $0x6] sm:$0x3] %v387_v18 }
 0x1b9   :  { %v535_v23 = vpop.f32.mrb[0].mxu1 }
 0x1ba   :  { %v243_v24 = vadd.f32 %v535_v23, %v437_v22  ;;  %v237_v25 = vpop.f32.mrb[1].mxu1 }
 0x1bb   :  { %v238_v26 = vadd.f32 %v437_v22, %v237_v25 }
 0x1bc   :  { %v257_v27 = vmax.f32 %v243_v24, 0.0 }
 0x1bd   :  { %v256_v28 = vmax.f32 %v238_v26, 0.0  ;;  %v538_v29 = vpop.f32.mrb[2].mxu1 }
 0x1be   :  { %vm849_vm8 = vcmp.gt.f32.partialorder %v257_v27, 0.0  ;;  %v253_v31 = vadd.f32 %v538_v29, %v437_v22  ;;  %v247_v32 = vpop.f32.mrb[3].mxu1 }
 0x1bf   :  { %vm392_vm9 = vcmp.gt.f32.partialorder %v256_v28, 0.0  ;;  %v248_v33 = vadd.f32 %v437_v22, %v247_v32  ;;  %571 = vmatprep.mubr.f32.mxu0 %v256_v28 }
 0x1c0   :  { %vm396_vm10 = vmpackc.low %vm849_vm8, %vm392_vm9  ;;  %v259_v34 = vmax.f32 %v253_v31, 0.0  ;;  %572 = vmatmul.mubr.f32.vlgmr.msra.gmra.mrb[4].mxu0 %v257_v27 }
 0x1c1   :  { %v258_v35 = vmax.f32 %v248_v33, 0.0 }
 0x1c2   :  { %vm395_vm11 = vcmp.gt.f32.partialorder %v259_v34, 0.0 }
 0x1c3   :  { %vm394_vm12 = vcmp.gt.f32.partialorder %v258_v35, 0.0  ;;  %574 = vmatprep.mubr.f32.mxu0 %v258_v35 }
 0x1c4   :  { %vm397_vm13 = vmpackc.low %vm395_vm11, %vm394_vm12  ;;  %575 = vmatmul.mubr.f32.gmra.mrb[6].mxu0 %v259_v34 }
 0x1c5   :  { %vm398_vm14 = vmpackc.even %vm397_vm13, %vm396_vm10 }
 0x1c6   :  { %v399_v36 = vsel %vm398_vm14, 16843009, %v650_v5 }
 0x1c7   :  { %v400_v37 = vunpack.c.0.s8 %v399_v36  ;;  %v401_v38 = vunpack.c.1.s8 %v399_v36  ;;  %v402_v39 = vunpack.c.2.s8 %v399_v36  ;;  %v403_v40 = vunpack.c.3.s8 %v399_v36 }
 0x1c9   :  { %v404_v41 = vpack.c.b16 %v400_v37, %v400_v37  ;;  %v406_v42 = vpack.c.b16 %v401_v38, %v401_v38  ;;  %v408_v43 = vpack.c.b16 %v402_v39, %v402_v39  ;;  %v410_v44 = vpack.c.b16 %v403_v40, %v403_v40 }
 0x1cb   :  { %v405_v45 = vpack.c.b8 %v404_v41, %v404_v41  ;;  %v407_v46 = vpack.c.b8 %v406_v42, %v406_v42  ;;  %v409_v47 = vpack.c.b8 %v408_v43, %v408_v43  ;;  %v411_v48 = vpack.c.b8 %v410_v44, %v410_v44 }
 0x1cd   :  { %412 = vst [vmem:[%s889_s8] sm:$0x3] %v405_v45  ;;  %413 = vst [vmem:[%s889_s8 + $0x2] sm:$0x3] %v407_v46 }
 0x1ce   :  { %414 = vst [vmem:[%s889_s8 + $0x4] sm:$0x3] %v409_v47  ;;  %415 = vst [vmem:[%s889_s8 + $0x6] sm:$0x3] %v411_v48 }
 0x293   :  { %v573_v50 = vpop.f32.mrb[4].mxu0 }
 0x294   :  { %v355_v51 = vadd.f32 %v573_v50, %v438_v49  ;;  %v349_v52 = vpop.f32.mrb[5].mxu0 }
 0x295   :  { %v350_v53 = vadd.f32 %v438_v49, %v349_v52 }
 0x296   :  { %417 = vst [vmem:[%s891_s9 + $0x8] sm:$0xff] %v355_v51 }
 0x297   :  { %416 = vst [vmem:[%s891_s9] sm:$0xff] %v350_v53  ;;  %v576_v54 = vpop.f32.mrb[6].mxu0 }
 0x298   :  { %v365_v55 = vadd.f32 %v576_v54, %v438_v49  ;;  %v359_v56 = vpop.f32.mrb[7].mxu0 }
 0x299   :  { %v360_v57 = vadd.f32 %v438_v49, %v359_v56 }
 0x29a   :  { %419 = vst [vmem:[%s891_s9 + $0x18] sm:$0xff] %v365_v55 }
 0x29b   :  { %418 = vst [vmem:[%s891_s9 + $0x10] sm:$0xff] %v360_v57 }

</bundles_post_ra>
